<compile_context>
chip_gen: v7x
topology: tpu7x:2x2x1
jax: 0.10.0
libtpu: 0.0.40
codegen_flags: <defaults>
</compile_context>

<pallas_src>
import functools

import jax
import jax.numpy as jnp
from jax.experimental import pallas as pl
from jax.experimental.pallas import tpu as pltpu


def _round_up(x, m):
    return (x + m - 1) // m * m


def critic_kernel(s_ref, w1t_ref, b1_ref, w2t_ref, b2_ref, w3_ref, b3_ref,
                  o_ref, *, act_dtype):
    """Feature-major MLP block.

    s_ref  : (TILE_B, state_dim)  f32  batch tile (natural layout)
    w1t_ref: (hidden, state_dim)  f32  fc1 weight, transposed
    b1_ref : (hidden, 1)          f32
    w2t_ref: (hidden, hidden)     f32  fc2 weight, transposed
    b2_ref : (hidden, 1)          f32
    w3_ref : (hidden, 1)          f32  fc3 (value head) weight column
    b3_ref : (1, 1)               f32
    o_ref  : (1, TILE_B)          f32  lane-dense values (batch on lanes)
    """
    s_blk = s_ref[...]                                          # (TILE_B, D)

    # fc1: h[f, b] = sum_k w1t[f, k] * s[b, k]  -> (hidden, TILE_B).
    # NT contraction (both last dims) lowers to a transposed-RHS matmul, so
    # the batch axis lands on lanes without an explicit transpose.
    h = jax.lax.dot_general(
        w1t_ref[...], s_blk,
        dimension_numbers=(((1,), (1,)), ((), ())),
        preferred_element_type=jnp.float32)
    # Bias add + tanh; act_dtype=bf16 doubles EUP throughput on v6e/v7x.
    h = jnp.tanh((h + b1_ref[...]).astype(act_dtype)).astype(jnp.float32)

    # fc2: (hidden, hidden) @ (hidden, TILE_B).
    h = jnp.dot(w2t_ref[...], h, preferred_element_type=jnp.float32)
    h = jnp.tanh((h + b2_ref[...]).astype(act_dtype)).astype(jnp.float32)

    # fc3 value head (N=1): keep it off the MXU -- VPU multiply + sublane
    # reduction produces a lane-dense (1, TILE_B) row directly.
    v = jnp.sum(h * w3_ref[...], axis=0, keepdims=True)          # (1, TILE_B)
    o_ref[...] = (v + b3_ref[...]).astype(o_ref.dtype)


def critic_forward(s, w1, b1, w2, b2, w3, b3, *, tile_b=8192,
                   act_dtype=jnp.float32):
    """Critic forward: v(s) for s of shape (B, state_dim) -> (B, 1)."""
    B, state_dim = s.shape
    hidden = w1.shape[1]

    # Megacore-aware tile: never larger than ceil(B/2) rounded to 128 (so a
    # v7x chip's two TensorCores both get work for medium batches), clamped to
    # [128, tile_b].  The grid handles the ragged last block -- no jnp.pad of
    # s (it is the dominant HBM read).
    half = _round_up(-(-B // 2), 128)
    tile_b = int(max(128, min(tile_b, half)))
    num_blocks = pl.cdiv(B, tile_b)

    # One-time, tiny weight reshapes/casts at the call boundary.
    w1t = jnp.asarray(w1, jnp.float32).T               # (hidden, state_dim)
    w2t = jnp.asarray(w2, jnp.float32).T               # (hidden, hidden)
    b1c = b1.reshape(hidden, 1).astype(jnp.float32)
    b2c = b2.reshape(hidden, 1).astype(jnp.float32)
    w3c = w3.reshape(hidden, 1).astype(jnp.float32)
    b3c = b3.reshape(1, 1).astype(jnp.float32)

    # Explicit VMEM budget (portable across v5e/v6e/v7x scoped defaults):
    # lane-padded s tile x2 buffers, sublane-padded output x2 buffers,
    # resident weights, plus activation-scratch headroom.
    lanes = 128
    s_bytes = 2 * tile_b * lanes * 4
    out_bytes = 2 * 8 * tile_b * 4
    w_bytes = 4 * (hidden * max(state_dim, lanes)
                   + hidden * max(hidden, lanes)
                   + 4 * max(hidden, 8) * lanes)
    act_bytes = 4 * _round_up(hidden, 8) * tile_b * 4
    vmem_limit = min(int(1.25 * (s_bytes + out_bytes + w_bytes + act_bytes))
                     + (1 << 20), 48 << 20)

    const = lambda i: (0, 0)                 # VMEM-resident across grid steps
    kernel = functools.partial(critic_kernel, act_dtype=act_dtype)

    out = pl.pallas_call(
        kernel,
        out_shape=jax.ShapeDtypeStruct((1, B), jnp.float32),
        grid_spec=pltpu.PrefetchScalarGridSpec(
            num_scalar_prefetch=0,
            grid=(num_blocks,),
            in_specs=[
                pl.BlockSpec((tile_b, state_dim), lambda i: (i, 0)),  # s tile
                pl.BlockSpec((hidden, state_dim), const),             # w1^T
                pl.BlockSpec((hidden, 1), const),                     # b1
                pl.BlockSpec((hidden, hidden), const),                # w2^T
                pl.BlockSpec((hidden, 1), const),                     # b2
                pl.BlockSpec((hidden, 1), const),                     # w3 col
                pl.BlockSpec((1, 1), const),                          # b3
            ],
            out_specs=pl.BlockSpec((1, tile_b), lambda i: (0, i)),
        ),
        compiler_params=pltpu.CompilerParams(
            dimension_semantics=("parallel",),
            vmem_limit_bytes=vmem_limit,
        ),
    )(s.astype(jnp.float32), w1t, b1c, w2t, b2c, w3c, b3c)

    # Layout plumbing only: lane-dense row back to (B, 1).
    return out[0].reshape(B, 1)


def orthogonal_weight(key, in_dim, out_dim, gain=1.0):
    # Deterministic orthogonal init (mirrors nn.init.orthogonal_ semantics).
    init = jax.nn.initializers.orthogonal(scale=gain)
    return init(key, (in_dim, out_dim), jnp.float32)


if __name__ == "__main__":
    batch = 8
    state_dim = 16
    hidden_width = 32

    key = jax.random.PRNGKey(0)
    k_s, k1, k2, k3 = jax.random.split(key, 4)

    s = jax.random.normal(k_s, (batch, state_dim), dtype=jnp.float32)

    # Parameters: orthogonal weights, zero biases (orthogonal_init).
    w1 = orthogonal_weight(k1, state_dim, hidden_width)
    b1 = jnp.zeros((hidden_width,), dtype=jnp.float32)
    w2 = orthogonal_weight(k2, hidden_width, hidden_width)
    b2 = jnp.zeros((hidden_width,), dtype=jnp.float32)
    w3 = orthogonal_weight(k3, hidden_width, 1)
    b3 = jnp.zeros((1,), dtype=jnp.float32)

    critic_fn = jax.jit(critic_forward, static_argnames=("tile_b", "act_dtype"))
    v_s = critic_fn(s, w1, b1, w2, b2, w3, b3)
    v_s = jax.block_until_ready(v_s)

    # Full-f32 reference of the original module.
    hf = jnp.tanh(s @ w1 + b1.reshape(1, -1))
    hf = jnp.tanh(hf @ w2 + b2.reshape(1, -1))
    ref = hf @ w3 + b3.reshape(1, 1)

    assert v_s.shape == (batch, 1)
    assert bool(jnp.all(jnp.isfinite(v_s)))
    assert jnp.allclose(v_s, ref, atol=1e-4, rtol=1e-4)

    print("KERNEL_OK")
</pallas_src>

<mosaic_0001>
module attributes {stable_mosaic.version = 11 : i64} {
  func.func @critic_kernel(%arg0: i32, %arg1: memref<128x16xf32, #tpu.memory_space<vmem>>, %arg2: memref<32x16xf32, #tpu.memory_space<vmem>>, %arg3: memref<32x1xf32, #tpu.memory_space<vmem>>, %arg4: memref<32x32xf32, #tpu.memory_space<vmem>>, %arg5: memref<32x1xf32, #tpu.memory_space<vmem>>, %arg6: memref<32x1xf32, #tpu.memory_space<vmem>>, %arg7: memref<1x1xf32, #tpu.memory_space<vmem>>, %arg8: memref<1x128xf32, #tpu.memory_space<vmem>>) attributes {dimension_semantics = [#tpu.dimension_semantics<parallel>], iteration_bounds = array<i64: 1>, scalar_prefetch = 0 : i64, scratch_operands = 0 : i64, tpu.core_type = #tpu.core_type<tc>, window_params = [{transform_indices = @transform_0, window_bounds = array<i64: 128, 16>}, {pipeline_mode = #tpu.pipeline_mode<synchronous>, transform_indices = @transform_1, window_bounds = array<i64: 32, 16>}, {pipeline_mode = #tpu.pipeline_mode<synchronous>, transform_indices = @transform_2, window_bounds = array<i64: 32, 1>}, {pipeline_mode = #tpu.pipeline_mode<synchronous>, transform_indices = @transform_3, window_bounds = array<i64: 32, 32>}, {pipeline_mode = #tpu.pipeline_mode<synchronous>, transform_indices = @transform_4, window_bounds = array<i64: 32, 1>}, {pipeline_mode = #tpu.pipeline_mode<synchronous>, transform_indices = @transform_5, window_bounds = array<i64: 32, 1>}, {pipeline_mode = #tpu.pipeline_mode<synchronous>, transform_indices = @transform_6, window_bounds = array<i64: 1, 1>}, {transform_indices = @transform_7, window_bounds = array<i64: 1, 128>}]} {
    %c0 = arith.constant 0 : index
    %c0_0 = arith.constant 0 : index
    %0 = vector.load %arg1[%c0, %c0_0] : memref<128x16xf32, #tpu.memory_space<vmem>>, vector<128x16xf32>
    %c0_1 = arith.constant 0 : index
    %c0_2 = arith.constant 0 : index
    %1 = vector.load %arg2[%c0_1, %c0_2] : memref<32x16xf32, #tpu.memory_space<vmem>>, vector<32x16xf32>
    %cst = arith.constant dense<0.000000e+00> : vector<32x128xf32>
    %2 = tpu.matmul %1, %0, %cst {dimension_numbers = #tpu.dot_dimension_numbers<[1], [1], [0], [0], [0, 0, 1, 0], [], []>} : vector<32x16xf32>, vector<128x16xf32>, vector<32x128xf32> -> vector<32x128xf32>
    %c0_3 = arith.constant 0 : index
    %c0_4 = arith.constant 0 : index
    %3 = vector.load %arg3[%c0_3, %c0_4] : memref<32x1xf32, #tpu.memory_space<vmem>>, vector<32x1xf32>
    %4 = vector.broadcast %3 : vector<32x1xf32> to vector<32x128xf32>
    %5 = arith.addf %2, %4 : vector<32x128xf32>
    %6 = math.tanh %5 : vector<32x128xf32>
    %c0_5 = arith.constant 0 : index
    %c0_6 = arith.constant 0 : index
    %7 = vector.load %arg4[%c0_5, %c0_6] : memref<32x32xf32, #tpu.memory_space<vmem>>, vector<32x32xf32>
    %cst_7 = arith.constant dense<0.000000e+00> : vector<32x128xf32>
    %8 = tpu.matmul %7, %6, %cst_7 {dimension_numbers = #tpu.dot_dimension_numbers<[1], [0], [0], [1], [0, 0, 1, 1], [], []>} : vector<32x32xf32>, vector<32x128xf32>, vector<32x128xf32> -> vector<32x128xf32>
    %c0_8 = arith.constant 0 : index
    %c0_9 = arith.constant 0 : index
    %9 = vector.load %arg5[%c0_8, %c0_9] : memref<32x1xf32, #tpu.memory_space<vmem>>, vector<32x1xf32>
    %10 = vector.broadcast %9 : vector<32x1xf32> to vector<32x128xf32>
    %11 = arith.addf %8, %10 : vector<32x128xf32>
    %12 = math.tanh %11 : vector<32x128xf32>
    %c0_10 = arith.constant 0 : index
    %c0_11 = arith.constant 0 : index
    %13 = vector.load %arg6[%c0_10, %c0_11] : memref<32x1xf32, #tpu.memory_space<vmem>>, vector<32x1xf32>
    %14 = vector.broadcast %13 : vector<32x1xf32> to vector<32x128xf32>
    %15 = arith.mulf %12, %14 : vector<32x128xf32>
    %cst_12 = arith.constant dense<0.000000e+00> : vector<128xf32>
    %16 = vector.multi_reduction <add>, %15, %cst_12 [0] : vector<32x128xf32> to vector<128xf32>
    %17 = vector.shape_cast %16 : vector<128xf32> to vector<1x128xf32>
    %c0_13 = arith.constant 0 : index
    %c0_14 = arith.constant 0 : index
    %18 = vector.load %arg7[%c0_13, %c0_14] : memref<1x1xf32, #tpu.memory_space<vmem>>, vector<1x1xf32>
    %19 = vector.broadcast %18 : vector<1x1xf32> to vector<1x128xf32>
    %20 = arith.addf %17, %19 : vector<1x128xf32>
    %c0_15 = arith.constant 0 : index
    %c0_16 = arith.constant 0 : index
    %21 = vector.load %arg8[%c0_15, %c0_16] : memref<1x128xf32, #tpu.memory_space<vmem>>, vector<1x128xf32>
    tpu.vector_store %arg8[%c0_15, %c0_16], %20 {strides = array<i32>} : memref<1x128xf32, #tpu.memory_space<vmem>>, vector<1x128xf32>,
    return
  }
  func.func @transform_0(%arg0: i32) -> (i32, i32) {
    %c0_i32 = arith.constant 0 : i32
    %c0_i32_0 = arith.constant 0 : i32
    return %arg0, %c0_i32 : i32, i32
  }
  func.func @transform_1(%arg0: i32) -> (i32, i32) {
    %c0_i32 = arith.constant 0 : i32
    %c0_i32_0 = arith.constant 0 : i32
    %c0_i32_1 = arith.constant 0 : i32
    return %c0_i32, %c0_i32_0 : i32, i32
  }
  func.func @transform_2(%arg0: i32) -> (i32, i32) {
    %c0_i32 = arith.constant 0 : i32
    %c0_i32_0 = arith.constant 0 : i32
    %c0_i32_1 = arith.constant 0 : i32
    return %c0_i32, %c0_i32_0 : i32, i32
  }
  func.func @transform_3(%arg0: i32) -> (i32, i32) {
    %c0_i32 = arith.constant 0 : i32
    %c0_i32_0 = arith.constant 0 : i32
    %c0_i32_1 = arith.constant 0 : i32
    return %c0_i32, %c0_i32_0 : i32, i32
  }
  func.func @transform_4(%arg0: i32) -> (i32, i32) {
    %c0_i32 = arith.constant 0 : i32
    %c0_i32_0 = arith.constant 0 : i32
    %c0_i32_1 = arith.constant 0 : i32
    return %c0_i32, %c0_i32_0 : i32, i32
  }
  func.func @transform_5(%arg0: i32) -> (i32, i32) {
    %c0_i32 = arith.constant 0 : i32
    %c0_i32_0 = arith.constant 0 : i32
    %c0_i32_1 = arith.constant 0 : i32
    return %c0_i32, %c0_i32_0 : i32, i32
  }
  func.func @transform_6(%arg0: i32) -> (i32, i32) {
    %c0_i32 = arith.constant 0 : i32
    %c0_i32_0 = arith.constant 0 : i32
    %c0_i32_1 = arith.constant 0 : i32
    return %c0_i32, %c0_i32_0 : i32, i32
  }
  func.func @transform_7(%arg0: i32) -> (i32, i32) {
    %c0_i32 = arith.constant 0 : i32
    %c0_i32_0 = arith.constant 0 : i32
    return %c0_i32, %arg0 : i32, i32
  }
}

</mosaic_0001>

<bundles_post_ra>
// kernel: critic_forward.1
= control target key start
LH: loop header
LB: loop body
LE: loop exit
PB: predicated region body
PF: predicated region fallthrough
CT: control target
= control target key end

     0   :  { %s831_s0 = inlined_call_operand.vmem [shape: f32[8,16], index: 0, kind: input, shape index: {}]   ;;  %s832_s1 = inlined_call_operand.vmem [shape: f32[32,16], index: 1, kind: input, shape index: {}]   ;;  %s833_s2 = inlined_call_operand.vmem [shape: f32[32,1], index: 2, kind: input, shape index: {}]   ;;  %s834_s3 = inlined_call_operand.vmem [shape: f32[32,32], index: 3, kind: input, shape index: {}]   ;;  %s835_s4 = inlined_call_operand.vmem [shape: f32[32,1], index: 4, kind: input, shape index: {}]   ;;  %s836_s5 = inlined_call_operand.vmem [shape: f32[32,1], index: 5, kind: input, shape index: {}]   ;;  %s837_s6 = inlined_call_operand.<no memory space> [shape: f32[1,1], index: 6, kind: input, shape index: {}]   ;;  %s838_s7 = inlined_call_operand.hbm [shape: f32[1,8], index: 7, kind: output, shape index: {}]  }
   0x1   :  { %v12_v0 = vstv %s837_s6 }
   0x2   :  { %13 = vst [vmem:[#allocation2] sm:$0x1] %v12_v0 }
   0x3   :  { %v29_v1 = vld [vmem:[%s831_s0] sm:$0xff]  ;;  %v30_v2 = vld [vmem:[%s831_s0 + $0x8] sm:$0xff]  ;;  %vm73_vm0 = vcmask 130048   ;;  %v31_v3 = vld [vmem:[%s831_s0 + $0x10] sm:$0xff]  ;;  %v620_v7 = vmov 0  }
   0x4   :  { %v520_v4 = vpack.c.bf16 %v30_v2, %v29_v1  ;;  %vm676_vm1 = vmpackc.low %vm73_vm0, %vm73_vm0  ;;  %v32_v6 = vld [vmem:[%s831_s0 + $0x18] sm:$0xff]  ;;  %578 = vset.pattern.permute.xlu0 %v620_v7  ;;  %579 = vset.pattern.permute.xlu1 %v620_v7  ;;  %v45_v9 = vld [vmem:[%s832_s1] sm:$0xff] }
   0x5   :  { %v526_v8 = vpack.c.bf16 %v32_v6, %v31_v3  ;;  %v33_v10 = vld [vmem:[%s831_s0 + $0x20] sm:$0xff]  ;;  %v34_v11 = vld [vmem:[%s831_s0 + $0x28] sm:$0xff]  ;;  %500 = vmatprep.mubr.msk.f32.mxu0 %vm73_vm0, %v45_v9  ;;  %v51_v13 = vld [vmem:[%s833_s2 + $0x10] sm:$0xff] }
   0x6   :  { %522 = vmatprep.subr.msk.bf16.mxu0 %vm676_vm1, %v520_v4  ;;  %v49_v12 = vld [vmem:[%s833_s2] sm:$0xff]  ;;  %65 = vperm.xlu1 %579, %v51_v13   ;;  %v532_v14 = vpack.c.bf16 %v34_v11, %v33_v10  ;;  %v50_v15 = vld [vmem:[%s833_s2 + $0x8] sm:$0xff]  ;;  %v52_v16 = vld [vmem:[%s833_s2 + $0x18] sm:$0xff] }
   0x7   :  { %525 = vmatpush3.bf16.xpose.msk.msra.mxu0 %vm676_vm1, %v520_v4  ;;  %55 = vperm.xlu0 %578, %v49_v12  }
   0x8   :  { %528 = vmatprep.subr.msk.bf16.mxu0 %vm676_vm1, %v526_v8 }
   0x9   :  { %14 = vsyncpa [#allocation4], 0  ;;  %v227_v17 = vld [vmem:[%s835_s4] sm:$0xff]  ;;  %v35_v18 = vld [vmem:[%s831_s0 + $0x30] sm:$0xff]  ;;  %vm251_vm2 = vcmask 261120  }
   0xa   :  { %70 = vperm.xlu1 %579, %v52_v16   ;;  %v36_v19 = vld [vmem:[%s831_s0 + $0x38] sm:$0xff]  ;;  %v228_v20 = vld [vmem:[%s835_s4 + $0x8] sm:$0xff]  ;;  %v229_v22 = vld [vmem:[%s835_s4 + $0x10] sm:$0xff] }
   0xb   :  { %60 = vperm.xlu0 %578, %v50_v15   ;;  %v538_v21 = vpack.c.bf16 %v36_v19, %v35_v18  ;;  %v230_v23 = vld [vmem:[%s835_s4 + $0x18] sm:$0xff]  ;;  %v353_v24 = vld [vmem:[%s836_s5] sm:$0xff]  ;;  %v38_v26 = vld [vmem:[%s831_s0 + $0x48] sm:$0xff] }
   0xc   :  { %v37_v25 = vld [vmem:[%s831_s0 + $0x40] sm:$0xff]  ;;  %v354_v27 = vld [vmem:[%s836_s5 + $0x8] sm:$0xff]  ;;  %v355_v29 = vld [vmem:[%s836_s5 + $0x10] sm:$0xff] }
   0xd   :  { %v544_v28 = vpack.c.bf16 %v38_v26, %v37_v25  ;;  %v356_v30 = vld [vmem:[%s836_s5 + $0x18] sm:$0xff]  ;;  %v390_v31 = vld [vmem:[#allocation2] sm:$0x1]  ;;  %v39_v32 = vld [vmem:[%s831_s0 + $0x50] sm:$0xff] }
   0xe   :  { %238 = vperm.xlu1 %579, %v228_v20   ;;  %v40_v33 = vld [vmem:[%s831_s0 + $0x58] sm:$0xff]  ;;  %v41_v35 = vld [vmem:[%s831_s0 + $0x60] sm:$0xff]  ;;  %v42_v36 = vld [vmem:[%s831_s0 + $0x68] sm:$0xff] }
   0xf   :  { %531 = vmatpush3.bf16.xpose.msk.msra.mxu0 %vm676_vm1, %v526_v8  ;;  %233 = vperm.xlu0 %578, %v227_v17   ;;  %v550_v34 = vpack.c.bf16 %v40_v33, %v39_v32  ;;  %v556_v37 = vpack.c.bf16 %v42_v36, %v41_v35  ;;  %v43_v38 = vld [vmem:[%s831_s0 + $0x70] sm:$0xff]  ;;  %v44_v39 = vld [vmem:[%s831_s0 + $0x78] sm:$0xff]  ;;  %v46_v41 = vld [vmem:[%s832_s1 + $0x8] sm:$0xff] }
  0x10   :  { %534 = vmatprep.subr.msk.bf16.mxu0 %vm676_vm1, %v532_v14  ;;  %v562_v40 = vpack.c.bf16 %v44_v39, %v43_v38  ;;  %v47_v42 = vld [vmem:[%s832_s1 + $0x10] sm:$0xff]  ;;  %v48_v43 = vld [vmem:[%s832_s1 + $0x18] sm:$0xff]  ;;  %v223_v44 = vld [vmem:[%s834_s3] sm:$0xff] }
  0x11   :  { %514 = vmatprep.mubr.msk.f32.mxu1 %vm251_vm2, %v223_v44  ;;  %v224_v63 = vld [vmem:[%s834_s3 + $0x8] sm:$0xff]  ;;  %v225_v0 = vld [vmem:[%s834_s3 + $0x10] sm:$0xff]  ;;  %v226_v1 = vld [vmem:[%s834_s3 + $0x18] sm:$0xff]  ;;  %s621_s3 = smov [#allocation3]  }
  0x12   :  { %248 = vperm.xlu1 %579, %v230_v23   ;;  %s408_s19 = sshll.u32 %s621_s3, 4  ;;  %s409_s19 = int_to_ptr.vmem [resolvable:$true] %s408_s19 }
  0x13   :  { %243 = vperm.xlu0 %578, %v229_v22   ;;  %s596_s20 = scalar_lea.vmem %s409_s19, 16  ;;  %s600_s21 = scalar_lea.vmem %s409_s19, 32 }
  0x14   :  { %p597_p0 = scmp.ne.s32.totalorder %s409_s19, %s596_s20  ;;  %p601_p1 = scmp.lt.s32.totalorder %s409_s19, %s409_s19 }
  0x15   :  { %p602_p2 = scmp.lt.s32.totalorder %s600_s21, %s596_s20 }
  0x16   :  { %364 = vperm.xlu1 %579, %v354_v27  }
  0x17   :  { %537 = vmatpush3.bf16.xpose.msk.msra.mxu0 %vm676_vm1, %v532_v14  ;;  %359 = vperm.xlu0 %578, %v353_v24   ;;  %p603_p3 = por %p602_p2, %p601_p1 }
  0x18   :  { %540 = vmatprep.subr.msk.bf16.mxu0 %vm676_vm1, %v538_v21 }
  0x19   :  { %p604_p4 = pnand %p603_p3, %p597_p0 }
  0x1a   :  { %374 = vperm.xlu1 %579, %v356_v30  }
  0x1b   :  { %369 = vperm.xlu0 %578, %v355_v29  }
  0x1f   :  { %543 = vmatpush3.bf16.xpose.msk.msra.mxu0 %vm676_vm1, %v538_v21  ;;  %393 = vperm.xlu0 %578, %v390_v31  }
  0x20   :  { %546 = vmatprep.subr.msk.bf16.mxu0 %vm676_vm1, %v544_v28 }
  0x27   :  { %549 = vmatpush3.bf16.xpose.msk.msra.mxu0 %vm676_vm1, %v544_v28  ;;  %v396_v28 = vlaneseq }
  0x28   :  { %552 = vmatprep.subr.msk.bf16.mxu0 %vm676_vm1, %v550_v34 }
  0x29   :  { %v397_v31 = vshrl.u32 %v396_v28, 7 }
  0x2f   :  { %555 = vmatpush3.bf16.xpose.msk.msra.mxu0 %vm676_vm1, %v550_v34  ;;  %v398_v34 = vsub.s32 0, %v397_v31 }
  0x30   :  { %558 = vmatprep.subr.msk.bf16.mxu0 %vm676_vm1, %v556_v37 }
  0x37   :  { %561 = vmatpush3.bf16.xpose.msk.msra.mxu0 %vm676_vm1, %v556_v37 }
  0x38   :  { %564 = vmatprep.subr.msk.bf16.mxu0 %vm676_vm1, %v562_v40 }
  0x3f   :  { %567 = vmatpush3.bf16.xpose.msk.msra.mxu0 %vm676_vm1, %v562_v40 }
  0x46   :  { %501 = vmatmul.mubr.msk.f32.vlgmr.msra.gmra.mrb[0].mxu0 %vm73_vm0, %v46_v41 }
  0x47   :  { %503 = vmatprep.mubr.msk.f32.mxu0 %vm73_vm0, %v47_v42 }
  0x4a   :  { %504 = vmatmul.mubr.msk.f32.gmra.mrb[2].mxu0 %vm73_vm0, %v48_v43 }
  0x85   :  { %v66_v46 = vpop.permute.xlu1 %65 }
  0x86   :  { %v56_v45 = vpop.permute.xlu0 %55 }
  0x89   :  { %v71_v52 = vpop.permute.xlu1 %70 }
  0x8a   :  { %v61_v47 = vpop.permute.xlu0 %60 }
  0x8d   :  { %v239_v2 = vpop.permute.xlu1 %238 }
  0x8e   :  { %v234_v3 = vpop.permute.xlu0 %233 }
  0x91   :  { %v249_v8 = vpop.permute.xlu1 %248 }
  0x92   :  { %v244_v10 = vpop.permute.xlu0 %243 }
  0x95   :  { %v365_v16 = vpop.permute.xlu1 %364 }
  0x96   :  { %v360_v14 = vpop.permute.xlu0 %359 }
  0x99   :  { %v375_v25 = vpop.permute.xlu1 %374 }
  0x9a   :  { %v370_v23 = vpop.permute.xlu0 %369 }
  0x9e   :  { %v394_v36 = vpop.permute.xlu0 %393 }
  0x9f   :  { %v399_v38 = vrot.slane %v394_v36, %v398_v34 }
 0x119   :  { %v502_v48 = vpop.f32.mrb[0].mxu0 }
 0x11a   :  { %v206_v49 = vadd.f32 %v502_v48, %v61_v47  ;;  %v200_v50 = vpop.f32.mrb[1].mxu0 }
 0x11b   :  { %v201_v51 = vadd.f32 %v200_v50, %v56_v45 }
 0x11c   :  { %580 = vtanh.f32 %v206_v49 }
 0x11d   :  { %582 = vtanh.f32 %v201_v51  ;;  %v505_v53 = vpop.f32.mrb[2].mxu0 }
 0x11e   :  { %v216_v54 = vadd.f32 %v505_v53, %v71_v52  ;;  %v210_v55 = vpop.f32.mrb[3].mxu0 }
 0x11f   :  { %v211_v56 = vadd.f32 %v210_v55, %v66_v46 }
 0x120   :  { %584 = vtanh.f32 %v216_v54 }
 0x121   :  { %586 = vtanh.f32 %v211_v56 }
 0x126   :  { %v581_v57 = vpop.eup %580 }
 0x127   :  { %v583_v58 = vpop.eup %582 }
 0x128   :  { %v568_v59 = vpack.c.bf16 %v581_v57, %v583_v58 }
 0x12a   :  { %v585_v60 = vpop.eup %584  ;;  %569 = vmatprep.subr.bf16.mxu1 %v568_v59 }
 0x12b   :  { %v587_v61 = vpop.eup %586  ;;  %571 = vmatpush3.bf16.msra.mxu1 %v568_v59 }
 0x12c   :  { %v572_v62 = vpack.c.bf16 %v585_v60, %v587_v61 }
 0x12e   :  { %573 = vmatprep.subr.bf16.mxu1 %v572_v62 }
 0x12f   :  { %575 = vmatpush3.bf16.msra.mxu1 %v572_v62 }
 0x132   :  { %515 = vmatmul.mubr.msk.f32.vlgmr.msra.gmra.mrb[0].mxu1 %vm251_vm2, %v224_v63 }
 0x133   :  { %517 = vmatprep.mubr.msk.f32.mxu1 %vm251_vm2, %v225_v0 }
 0x136   :  { %518 = vmatmul.mubr.msk.f32.gmra.mrb[2].mxu1 %vm251_vm2, %v226_v1 }
 0x205   :  { %v516_v4 = vpop.f32.mrb[0].mxu1 }
 0x206   :  { %v336_v5 = vadd.f32 %v516_v4, %v239_v2  ;;  %v330_v6 = vpop.f32.mrb[1].mxu1 }
 0x207   :  { %v331_v7 = vadd.f32 %v330_v6, %v234_v3 }
 0x208   :  { %588 = vtanh.f32 %v336_v5 }
 0x209   :  { %590 = vtanh.f32 %v331_v7  ;;  %v519_v9 = vpop.f32.mrb[2].mxu1 }
 0x20a   :  { %v346_v11 = vadd.f32 %v519_v9, %v249_v8  ;;  %v340_v12 = vpop.f32.mrb[3].mxu1 }
 0x20b   :  { %v341_v13 = vadd.f32 %v340_v12, %v244_v10 }
 0x20c   :  { %592 = vtanh.f32 %v346_v11 }
 0x20d   :  { %594 = vtanh.f32 %v341_v13 }
 0x212   :  { %v589_v15 = vpop.eup %588 }
 0x213   :  { %v591_v17 = vpop.eup %590  ;;  %v378_v18 = vmul.f32 %v589_v15, %v365_v16 }
 0x214   :  { %v377_v19 = vmul.f32 %v591_v17, %v360_v14 }
 0x216   :  { %v593_v20 = vpop.eup %592  ;;  %v381_v21 = vadd.f32 %v378_v18, %v377_v19 }
 0x217   :  { %v595_v22 = vpop.eup %594  ;;  %v380_v26 = vmul.f32 %v593_v20, %v375_v25 }
 0x218   :  { %v379_v24 = vmul.f32 %v595_v22, %v370_v23 }
 0x21a   :  { %v382_v27 = vadd.f32 %v381_v21, %v379_v24 }
 0x21c   :  { %v383_v29 = vadd.f32 %v382_v27, %v380_v26 }
 0x21e   :  { %v384_v30 = vrot.slane %v383_v29, 4 }
 0x220   :  { %v385_v32 = vadd.f32 %v384_v30, %v383_v29 }
 0x222   :  { %v386_v33 = vrot.slane %v385_v32, 2 }
 0x224   :  { %v387_v35 = vadd.f32 %v386_v33, %v385_v32 }
 0x226   :  { %v388_v37 = vrot.slane %v387_v35, 1 }
 0x228   :  { %v389_v39 = vadd.f32 %v388_v37, %v387_v35 }
 0x22a   :  { %v400_v40 = vadd.f32 %v399_v38, %v389_v39 }
 0x22c   :  { %401 = vst [vmem:[#allocation3] sm:$0x1] %v400_v40 }
 0x22d   :  { %607 = shalt.err (!%p604_p4)
}
 0x22e   :  { %s608_s24 = scalar_lea.hbm %s838_s7, 16 }
 0x22f   :  { %p609_p5 = scmp.ne.s32.totalorder %s838_s7, %s608_s24  ;;  %p612_p6 = scmp.lt.u32.totalorder %s608_s24, %s838_s7 }
 0x231   :  { %p614_p7 = pnand %p612_p6, %p609_p5 }
 0x233   :  { %617 = shalt.err (!%p614_p7)
}
 0x234   :  { %411 = dma.vmem_to_hbm [thread:$0]  %s409_s19, 16, %s838_s7, [#allocation4]  }
 0x235   :  { %618 = dma.done.wait [#allocation4], 16  }
 0x236   :  { %619 = vsyncadd [#allocation4], 4294967280 }
 0x237   :  { %415 = vsyncpa [#allocation4], 1 }

</bundles_post_ra>
